<compile_context>
chip_gen: v5e
topology: v5e:2x2
jax: 0.10.0
libtpu: 0.0.40
codegen_flags: <defaults>
</compile_context>

<pallas_src>
import jax
import jax.numpy as jnp
from jax.experimental import pallas as pl
from jax.experimental.pallas import tpu as pltpu

_LANES = 128             # vreg lane width (last dim)
_MAX_BLOCK_ROWS = 8192   # 8192 x 128 x 4B = 4 MiB per f32 block (2 MiB bf16)
_MIN_BLOCK_ROWS = 1024   # don't split tensors below ~512 KiB f32 across steps
_TARGET_GRID_STEPS = 4   # >= 2 balanced steps lets v7x's 2 TCs both work


def _round_up(x, m):
    return ((x + m - 1) // m) * m


def _sublane_multiple(dtype):
    # Min tile is (8,128) for 32-bit, (16,128) for 16-bit, (32,128) for 8-bit.
    itemsize = jnp.dtype(dtype).itemsize
    return 8 * max(1, 4 // itemsize)


def _h_sigmoid_kernel(x_ref, o_ref):
    x = x_ref[...]
    # relu6(x + 3) / 6  ==  clip(x + 3, 0, 6) * (1/6); dtype-preserving.
    y = jnp.minimum(jnp.maximum(x + 3.0, 0.0), 6.0) * (1.0 / 6.0)
    o_ref[...] = y.astype(o_ref.dtype)


def h_sigmoid(x, *, donate_input=False):
    """Hard sigmoid, elementwise, any shape, floating dtypes (Pallas on TPU)."""
    if not jnp.issubdtype(x.dtype, jnp.floating):
        # TODO(synk): integer inputs are intentionally unsupported (PyTorch
        # promotes them to float on the /6); cast explicitly before calling.
        raise TypeError(f"h_sigmoid expects a floating dtype, got {x.dtype}")

    orig_shape = x.shape
    dtype = x.dtype
    n = x.size
    sub = _sublane_multiple(dtype)

    # ---- lane-dense (rows, 128) layout, minimal (sublane-only) padding ----
    rows = pl.cdiv(n, _LANES)
    rows_padded = _round_up(rows, sub)
    padded_n = rows_padded * _LANES

    flat = x.reshape(-1)
    if padded_n != n:
        # Only the sub-tile tail is padded; h_sigmoid is defined everywhere,
        # so padding values are harmless and sliced off afterwards.
        flat = jnp.pad(flat, (0, padded_n - n))
    x2d = flat.reshape(rows_padded, _LANES)

    # ---- block size: big for bandwidth, >=2 steps for v7x on medium sizes --
    block_rows = min(
        _MAX_BLOCK_ROWS,
        max(_MIN_BLOCK_ROWS,
            _round_up(pl.cdiv(rows_padded, _TARGET_GRID_STEPS), sub)),
    )
    block_rows = min(block_rows, rows_padded)   # never exceed the array
    grid = (pl.cdiv(rows_padded, block_rows),)  # ragged last block is masked by Pallas

    alias = {0: 0} if (donate_input and padded_n == n) else {}

    out2d = pl.pallas_call(
        _h_sigmoid_kernel,
        out_shape=jax.ShapeDtypeStruct((rows_padded, _LANES), dtype),
        grid=grid,
        in_specs=[pl.BlockSpec((block_rows, _LANES), lambda i: (i, 0))],
        out_specs=pl.BlockSpec((block_rows, _LANES), lambda i: (i, 0)),
        input_output_aliases=alias,
        compiler_params=pltpu.CompilerParams(
            dimension_semantics=("parallel",),
            vmem_limit_bytes=64 << 20,
        ),
    )(x2d)

    out = out2d.reshape(-1)
    if padded_n != n:
        out = out[:n]
    return out.reshape(orig_shape)


def h_sigmoid_reference(x):
    """Plain-JAX reference mirroring the PyTorch forward: relu6(x + 3) / 6."""
    return jnp.clip(x + 3.0, 0.0, 6.0) / 6.0


if __name__ == "__main__":
    key = jax.random.PRNGKey(0)

    # Shape implied by the module's usage context (NCHW activations).
    B, C, H, W = 2, 4, 16, 16
    x = jax.random.normal(key, (B, C, H, W), jnp.float32) * 4.0

    out = jax.block_until_ready(h_sigmoid(x))
    ref = h_sigmoid_reference(x)
    assert out.shape == (B, C, H, W)
    assert out.dtype == x.dtype
    assert jnp.allclose(out, ref, atol=1e-6, rtol=1e-6), "f32 mismatch vs. reference"

    # Non-lane-aligned (small padded tail) path.
    x_odd = jax.random.normal(jax.random.PRNGKey(1), (3, 5, 7), jnp.float32) * 4.0
    out_odd = jax.block_until_ready(h_sigmoid(x_odd))
    assert jnp.allclose(out_odd, h_sigmoid_reference(x_odd), atol=1e-6, rtol=1e-6)

    # bf16 end-to-end path (16-row sublane tiling).
    x_bf16 = (jax.random.normal(jax.random.PRNGKey(2), (B, C, H, W), jnp.float32)
              * 4.0).astype(jnp.bfloat16)
    out_bf16 = jax.block_until_ready(h_sigmoid(x_bf16))
    assert out_bf16.dtype == jnp.bfloat16
    ref_bf16 = h_sigmoid_reference(x_bf16.astype(jnp.float32))
    assert jnp.allclose(out_bf16.astype(jnp.float32), ref_bf16, atol=1e-2, rtol=1e-2)

    print("KERNEL_OK")
</pallas_src>

<mosaic_0001>
module attributes {stable_mosaic.version = 11 : i64} {
  func.func @_h_sigmoid_kernel(%arg0: i32, %arg1: memref<16x128xf32, #tpu.memory_space<vmem>>, %arg2: memref<16x128xf32, #tpu.memory_space<vmem>>) attributes {dimension_semantics = [#tpu.dimension_semantics<parallel>], iteration_bounds = array<i64: 1>, scalar_prefetch = 0 : i64, scratch_operands = 0 : i64, tpu.core_type = #tpu.core_type<tc>, window_params = [{transform_indices = @transform_0, window_bounds = array<i64: 16, 128>}, {transform_indices = @transform_1, window_bounds = array<i64: 16, 128>}]} {
    %c0 = arith.constant 0 : index
    %c0_0 = arith.constant 0 : index
    %0 = vector.load %arg1[%c0, %c0_0] : memref<16x128xf32, #tpu.memory_space<vmem>>, vector<16x128xf32>
    %cst = arith.constant 3.000000e+00 : f32
    %1 = vector.broadcast %cst : f32 to vector<16x128xf32>
    %2 = arith.addf %0, %1 : vector<16x128xf32>
    %cst_1 = arith.constant 0.000000e+00 : f32
    %3 = vector.broadcast %cst_1 : f32 to vector<16x128xf32>
    %4 = arith.maximumf %2, %3 : vector<16x128xf32>
    %cst_2 = arith.constant 6.000000e+00 : f32
    %5 = vector.broadcast %cst_2 : f32 to vector<16x128xf32>
    %6 = arith.minimumf %4, %5 : vector<16x128xf32>
    %cst_3 = arith.constant 0.166666672 : f32
    %7 = vector.broadcast %cst_3 : f32 to vector<16x128xf32>
    %8 = arith.mulf %6, %7 : vector<16x128xf32>
    %c0_4 = arith.constant 0 : index
    %c0_5 = arith.constant 0 : index
    %9 = vector.load %arg2[%c0_4, %c0_5] : memref<16x128xf32, #tpu.memory_space<vmem>>, vector<16x128xf32>
    tpu.vector_store %arg2[%c0_4, %c0_5], %8 {strides = array<i32>} : memref<16x128xf32, #tpu.memory_space<vmem>>, vector<16x128xf32>,
    return
  }
  func.func @transform_0(%arg0: i32) -> (i32, i32) {
    %c0_i32 = arith.constant 0 : i32
    %c0_i32_0 = arith.constant 0 : i32
    return %arg0, %c0_i32 : i32, i32
  }
  func.func @transform_1(%arg0: i32) -> (i32, i32) {
    %c0_i32 = arith.constant 0 : i32
    %c0_i32_0 = arith.constant 0 : i32
    return %arg0, %c0_i32 : i32, i32
  }
}

</mosaic_0001>

<bundles_post_ra>
// kernel: tpu_custom_call.1
= control target key start
LH: loop header
LB: loop body
LE: loop exit
PB: predicated region body
PF: predicated region fallthrough
CT: control target
= control target key end

     0   :  { %6 = vsyncpa [#allocation3], 0  ;;  %s132_s0 = inlined_call_operand.hbm [shape: f32[16,128], index: 0, kind: input, shape index: {}]   ;;  %s133_s1 = inlined_call_operand.hbm [shape: f32[16,128], index: 1, kind: output, shape index: {}]  }
   0x1   :  { %7 = vsyncpa [#allocation4], 0  ;;  %s12_s8 = sshll.u32 %s132_s0, 4  ;;  %s112_s9 = smov [#allocation2]   ;;  %s13_s8 = int_to_ptr.hbm [resolvable:$true] %s12_s8 }
   0x2   :  { %s14_s10 = sshll.u32 %s112_s9, 4  ;;  %s113_s11 = smov 128   ;;  %s15_s10 = int_to_ptr.vmem [resolvable:$true] %s14_s10 }
   0x3   :  { %s114_s12 = smov 8  }
   0x4   :  { %20 = dma.hbm_to_vmem [thread:$0]  %s13_s8, 256, %s15_s10, [#allocation3], %s113_s11, %s113_s11, %s114_s12  }
   0x5   :  { %108 = dma.done.wait [#allocation3], 256  }
   0x6   :  { %109 = vsyncadd [#allocation3], 4294967040  ;;  %v25_v0 = vld [vmem:[#allocation2] sm:$0xff]  ;;  %v26_v1 = vld [vmem:[#allocation2 + $0x8] sm:$0xff]  ;;  %s115_s13 = smov [#allocation5]   ;;  %s43_s16 = sshll.u32 %s133_s1, 4  ;;  %s44_s16 = int_to_ptr.hbm [resolvable:$true] %s43_s16 }
   0x7   :  { %v27_v2 = vadd.f32 3.0, %v25_v0  ;;  %v28_v3 = vadd.f32 3.0, %v26_v1  ;;  %s41_s14 = sshll.u32 %s115_s13, 4  ;;  %s42_s14 = int_to_ptr.vmem [resolvable:$true] %s41_s14 }
   0x9   :  { %v29_v4 = vmax.f32 %v27_v2, 0.0  ;;  %v30_v5 = vmax.f32 %v28_v3, 0.0 }
   0xb   :  { %v31_v6 = vmin.f32 %v29_v4, 6.0  ;;  %v32_v7 = vmin.f32 %v30_v5, 6.0 }
   0xd   :  { %v33_v8 = vmul.f32 0.16666667, %v31_v6  ;;  %v34_v9 = vmul.f32 0.16666667, %v32_v7 }
   0xf   :  { %35 = vst [vmem:[#allocation5] sm:$0xff] %v33_v8 }
  0x10   :  { %36 = vst [vmem:[#allocation5 + $0x8] sm:$0xff] %v34_v9 }
  0x11   :  { %49 = dma.vmem_to_hbm [thread:$0]  %s42_s14, 256, %s44_s16, [#allocation4], %s113_s11, %s113_s11, %s114_s12  }
  0x12   :  { %110 = dma.done.wait [#allocation4], 256  }
  0x13   :  { %111 = vsyncadd [#allocation4], 4294967040 }
  0x14   :  { %54 = vsyncpa [#allocation3], 1 }
  0x15   :  { %55 = vsyncpa [#allocation4], 1 }

</bundles_post_ra>
